<compile_context>
chip_gen: v6e
topology: v6e:2x2x1
jax: 0.10.0
libtpu: 0.0.40
codegen_flags: <defaults>
</compile_context>

<pallas_src>
import functools

import jax
import jax.numpy as jnp
from jax.experimental import pallas as pl
from jax.experimental.pallas import tpu as pltpu


def _rope_kernel(cos_ref, sin_signed_ref, q_ref, k_ref, qo_ref, ko_ref):
    """RoPE on one (bh_tile, rows_tile, D) block (last dim == head_dim).

    rotate_half(x) * sin == roll(x, D//2, last_axis) * sin_signed, where
    sin_signed = concat(-sin[..., :D//2], sin[..., D//2:]) is precomputed once
    at init.  The roll runs on the XLU slot (free relative to the VPU/vst slots
    binding this HBM-roofline elementwise kernel).  Shift is exactly half the
    lane dim, so the rotation direction convention is irrelevant here.
    """
    cos = cos_ref[...][None]            # (1, rows_tile, D) — broadcast over bh
    sin_s = sin_signed_ref[...][None]   # (1, rows_tile, D)
    q = q_ref[...]                      # (bh_tile, rows_tile, D)
    k = k_ref[...]
    last = q.ndim - 1                   # pltpu.roll needs a non-negative axis
    half = q.shape[last] // 2
    q_rot = pltpu.roll(q, shift=half, axis=last)
    k_rot = pltpu.roll(k, shift=half, axis=last)
    qo_ref[...] = (q * cos + q_rot * sin_s).astype(qo_ref.dtype)
    ko_ref[...] = (k * cos + k_rot * sin_s).astype(ko_ref.dtype)


def _rope_kernel_packed(head_dim, cos_ref, sin_signed_ref, q_ref, k_ref,
                        qo_ref, ko_ref):
    """RoPE on a lane-dense packed block (bh_tile, rows_tile, 128).

    Each 128-lane row holds 128 // head_dim consecutive sequence positions, so
    stores are unmasked even for head_dim < 128.  rotate_half is a *segmented*
    roll: within each head_dim segment, lane l < D/2 needs x[l + D/2] and lane
    l >= D/2 needs x[l - D/2].  Expressed as two whole-row XLU rolls plus a
    VPU select — all off the DMA/store path that bounds this mem-bound kernel.
    """
    cos = cos_ref[...][None]            # (1, rows_tile, 128)
    sin_s = sin_signed_ref[...][None]
    q = q_ref[...]                      # (bh_tile, rows_tile, 128)
    k = k_ref[...]
    last = q.ndim - 1
    lanes = q.shape[last]               # 128
    half = head_dim // 2
    lane_idx = jax.lax.broadcasted_iota(jnp.int32, q.shape, last)
    first_half = (lane_idx % head_dim) < half

    def rotate(x):
        fwd = pltpu.roll(x, shift=lanes - half, axis=last)  # x[l + half] -> l
        bwd = pltpu.roll(x, shift=half, axis=last)          # x[l - half] -> l
        return jnp.where(first_half, fwd, bwd)

    qo_ref[...] = (q * cos + rotate(q) * sin_s).astype(qo_ref.dtype)
    ko_ref[...] = (k * cos + rotate(k) * sin_s).astype(ko_ref.dtype)


def _pick_tiles(BH, rows, lane, itemsize, sublane):
    """Pick (bh_tile, rows_tile) for streaming (BH, rows, lane) blocks.

    Targets ~4 MiB per q/k block (at v7x's 3.2 TB/s HBM a 1 MiB block pays
    ~25% in the ~0.35us fixed per-step overhead; 4 MiB pays <7%), while
    capping the (rows_tile, lane) slab at ~2 MiB so the cos/sin blocks stay
    small.  Worst-case resident VMEM:
        q, k, q_out, k_out : 4 arrays x 2 buffers x 4 MiB = 32 MiB
        cos, sin_signed    : 2 arrays x 2 buffers x 2 MiB =  8 MiB
    ~= 40 MiB, under the 48 MiB scoped limit and v7x's 64 MiB/TC physical VMEM
    (v5e/v6e have 128 MiB, so this is conservative there).
    """
    qk_target = 4 << 20
    slab_cap = 2 << 20
    row_bytes = max(1, lane * itemsize)

    if rows * row_bytes <= slab_cap or rows % sublane != 0:
        # TODO(synk): a very long rows axis not divisible by the sublane pack
        # falls back to a single full-rows block and may exceed the VMEM cap.
        rows_tile = rows
    else:
        rows_tile = sublane
        cap_rows = max(sublane, slab_cap // row_bytes)
        for t in range(sublane, min(rows, cap_rows) + 1, sublane):
            if rows % t == 0:
                rows_tile = t
    slab_bytes = rows_tile * row_bytes

    bh_tile = max(1, min(BH, qk_target // slab_bytes))
    while BH % bh_tile != 0:            # exact grid, no ragged blocks
        bh_tile -= 1

    # v7x megacore: if everything fits in one grid step, split the BH axis so
    # both TensorCores get work (v5e/v6e single-TC unaffected).
    if rows_tile == rows and bh_tile == BH and BH % 2 == 0 and BH >= 2:
        bh_tile = BH // 2
    return bh_tile, rows_tile


def fold_rotary_sign(sin_cached):
    """Fold the rotate_half sign into the sin cache once at module init:
    rotate_half(x) * sin == roll(x, D/2) * concat(-sin[..., :D/2], sin[..., D/2:]).
    """
    half = sin_cached.shape[-1] // 2
    return jnp.concatenate([-sin_cached[..., :half], sin_cached[..., half:]],
                           axis=-1)


@functools.partial(jax.jit, static_argnames=("seq_len", "offset"))
def quant_rotary_emb_forward(cos_cached, sin_signed_cached, x, q, k, seq_len,
                             offset=0):
    """Mirrors QuantRotaryEmb.forward (non-reordered path).

    cos_cached:        (1, 1, max_seq, D) original cos cache.
    sin_signed_cached: (1, 1, max_seq, D) sin cache with the rotate_half sign
                       pre-folded (fold_rotary_sign), done once at init.
    x: supplies dtype only (as in the PyTorch module).
    q, k: (B, H, q_len, D).  Returns (q_embed, k_embed), same shape/dtype.
    """
    B, H, S, D = q.shape
    assert D % 2 == 0, "head_dim must be even for rotate_half"

    # Glue (slice + dtype cast) stays in plain JAX, matching:
    #   cos = cos_cached[:, :, :seq_len].to(x.dtype)[..., offset:offset+q_len, :]
    cos = cos_cached[0, 0, :seq_len].astype(x.dtype)[offset:offset + S, :]
    sin_s = sin_signed_cached[0, 0, :seq_len].astype(x.dtype)[offset:offset + S, :]

    BH = B * H
    itemsize = jnp.dtype(q.dtype).itemsize
    sublane = {4: 8, 2: 16, 1: 32}.get(itemsize, 8)

    # Lane-dense packing for head_dim < 128: view the contiguous (S, D) slab as
    # (S*D/128, 128) rows -> full 128-lane stores instead of masked vst.msk.
    use_packed = (D < 128) and (128 % D == 0) and ((S * D) % 128 == 0)
    if use_packed:
        lane = 128
        rows = (S * D) // 128
        kernel = functools.partial(_rope_kernel_packed, D)
        cos_b = cos.reshape(rows, lane)
        sin_b = sin_s.reshape(rows, lane)
    else:
        # TODO(synk): head_dims that neither divide nor are multiples of 128
        # (e.g. 80, 96) still produce masked partial stores on the last dim.
        lane = D
        rows = S
        kernel = _rope_kernel
        cos_b = cos
        sin_b = sin_s

    qf = q.reshape(BH, rows, lane)
    kf = k.reshape(BH, rows, lane)

    bh_tile, rows_tile = _pick_tiles(BH, rows, lane, itemsize, sublane)
    # Rows axis OUTER, BH axis INNER: the cos/sin block index depends only on
    # the rows step, so it stays constant across consecutive (fast BH) grid
    # steps and Pallas skips re-fetching cos/sin from HBM.
    grid = (rows // rows_tile, BH // bh_tile)

    qk_spec = pl.BlockSpec((bh_tile, rows_tile, lane), lambda j, i: (i, j, 0))
    cs_spec = pl.BlockSpec((rows_tile, lane), lambda j, i: (j, 0))

    # NOTE: no input_output_aliases — with non-donated jit arguments XLA would
    # insert defensive copies of q/k (a full extra HBM read+write pass).
    # Callers that donate q/k can re-add input_output_aliases={2: 0, 3: 1}
    # together with donate_argnums for a genuinely in-place update.
    q_out, k_out = pl.pallas_call(
        kernel,
        out_shape=(
            jax.ShapeDtypeStruct((BH, rows, lane), q.dtype),
            jax.ShapeDtypeStruct((BH, rows, lane), k.dtype),
        ),
        grid=grid,
        in_specs=[cs_spec, cs_spec, qk_spec, qk_spec],
        out_specs=(qk_spec, qk_spec),
        compiler_params=pltpu.CompilerParams(
            dimension_semantics=("parallel", "parallel"),
            vmem_limit_bytes=48 * 1024 * 1024,
        ),
    )(cos_b, sin_b, qf, kf)

    return q_out.reshape(B, H, S, D), k_out.reshape(B, H, S, D)


def make_rotary_caches(max_seq_len, head_dim, base=10000.0, dtype=jnp.float32):
    """Deterministic construction of cos_cached / sin_cached, shape (1,1,max_seq,D)."""
    inv_freq = 1.0 / (base ** (jnp.arange(0, head_dim, 2, dtype=jnp.float32) / head_dim))
    t = jnp.arange(max_seq_len, dtype=jnp.float32)
    freqs = jnp.einsum("i,j->ij", t, inv_freq)          # (max_seq, D/2)
    emb = jnp.concatenate([freqs, freqs], axis=-1)      # (max_seq, D)
    cos_cached = jnp.cos(emb)[None, None, :, :].astype(dtype)
    sin_cached = jnp.sin(emb)[None, None, :, :].astype(dtype)
    return cos_cached, sin_cached


def _reference_forward(cos_cached, sin_cached, x, q, k, seq_len, offset=0):
    """Pure-JAX reference mirroring the PyTorch forward (uses the raw sin cache)."""
    cos = cos_cached[:, :, :seq_len].astype(x.dtype)
    sin = sin_cached[:, :, :seq_len].astype(x.dtype)
    cos = cos[..., offset:q.shape[-2] + offset, :]
    sin = sin[..., offset:q.shape[-2] + offset, :]

    def rotate_half(t):
        half = t.shape[-1] // 2
        return jnp.concatenate([-t[..., half:], t[..., :half]], axis=-1)

    q_embed = q * cos + rotate_half(q) * sin
    k_embed = k * cos + rotate_half(k) * sin
    return q_embed, k_embed


def _run_case(B, H, S, D, max_seq, seed):
    key = jax.random.PRNGKey(seed)
    kq, kk, kx = jax.random.split(key, 3)
    q = jax.random.normal(kq, (B, H, S, D), dtype=jnp.float32)
    k = jax.random.normal(kk, (B, H, S, D), dtype=jnp.float32)
    x = jax.random.normal(kx, (B, S, H * D), dtype=jnp.float32)  # dtype only

    cos_cached, sin_cached = make_rotary_caches(max_seq, D)
    sin_signed_cached = fold_rotary_sign(sin_cached)   # once, at "module init"

    q_ref, k_ref = _reference_forward(cos_cached, sin_cached, x, q, k,
                                      seq_len=S, offset=0)
    q_embed, k_embed = quant_rotary_emb_forward(
        cos_cached, sin_signed_cached, x, q, k, seq_len=S, offset=0)
    jax.block_until_ready((q_embed, k_embed))

    assert q_embed.shape == q.shape and k_embed.shape == k.shape
    assert jnp.allclose(q_embed, q_ref, atol=1e-5, rtol=1e-5)
    assert jnp.allclose(k_embed, k_ref, atol=1e-5, rtol=1e-5)


if __name__ == "__main__":
    # TODO(synk): the `reorderd()` index-permutation path is offline cache
    # preprocessing (a plain gather over the caches), not part of the forward
    # hot path; only the default (non-reordered) path is exercised here.

    # Small shapes consistent with the module's forward (packed head_dim < 128
    # path): batch=2, heads=4, seq=8, head_dim=32.
    _run_case(B=2, H=4, S=8, D=32, max_seq=16, seed=0)
    # Production-style head_dim=128 (lane-dense unpacked path).
    _run_case(B=1, H=2, S=16, D=128, max_seq=32, seed=1)

    print("KERNEL_OK")
</pallas_src>

<mosaic_0001>
module attributes {stable_mosaic.version = 11 : i64} {
  func.func @_rope_kernel_packed(%arg0: i32, %arg1: i32, %arg2: memref<2x128xf32, #tpu.memory_space<vmem>>, %arg3: memref<2x128xf32, #tpu.memory_space<vmem>>, %arg4: memref<4x2x128xf32, #tpu.memory_space<vmem>>, %arg5: memref<4x2x128xf32, #tpu.memory_space<vmem>>, %arg6: memref<4x2x128xf32, #tpu.memory_space<vmem>>, %arg7: memref<4x2x128xf32, #tpu.memory_space<vmem>>) attributes {dimension_semantics = [#tpu.dimension_semantics<parallel>, #tpu.dimension_semantics<parallel>], iteration_bounds = array<i64: 1, 2>, scalar_prefetch = 0 : i64, scratch_operands = 0 : i64, tpu.core_type = #tpu.core_type<tc>, window_params = [{transform_indices = @transform_0, window_bounds = array<i64: 2, 128>}, {transform_indices = @transform_1, window_bounds = array<i64: 2, 128>}, {transform_indices = @transform_2, window_bounds = array<i64: 4, 2, 128>}, {transform_indices = @transform_3, window_bounds = array<i64: 4, 2, 128>}, {transform_indices = @transform_4, window_bounds = array<i64: 4, 2, 128>}, {transform_indices = @transform_5, window_bounds = array<i64: 4, 2, 128>}]} {
    %c0 = arith.constant 0 : index
    %c0_0 = arith.constant 0 : index
    %0 = vector.load %arg2[%c0, %c0_0] : memref<2x128xf32, #tpu.memory_space<vmem>>, vector<2x128xf32>
    %1 = vector.shape_cast %0 : vector<2x128xf32> to vector<1x2x128xf32>
    %c0_1 = arith.constant 0 : index
    %c0_2 = arith.constant 0 : index
    %2 = vector.load %arg3[%c0_1, %c0_2] : memref<2x128xf32, #tpu.memory_space<vmem>>, vector<2x128xf32>
    %3 = vector.shape_cast %2 : vector<2x128xf32> to vector<1x2x128xf32>
    %c0_3 = arith.constant 0 : index
    %c0_4 = arith.constant 0 : index
    %c0_5 = arith.constant 0 : index
    %4 = vector.load %arg4[%c0_3, %c0_4, %c0_5] : memref<4x2x128xf32, #tpu.memory_space<vmem>>, vector<4x2x128xf32>
    %c0_6 = arith.constant 0 : index
    %c0_7 = arith.constant 0 : index
    %c0_8 = arith.constant 0 : index
    %5 = vector.load %arg5[%c0_6, %c0_7, %c0_8] : memref<4x2x128xf32, #tpu.memory_space<vmem>>, vector<4x2x128xf32>
    %6 = tpu.iota {dimensions = array<i32: 2>} : vector<4x2x128xi32>
    %c32_i32 = arith.constant 32 : i32
    %c0_i32 = arith.constant 0 : i32
    %7 = arith.cmpi eq, %c32_i32, %c0_i32 : i32
    %c1_i32 = arith.constant 1 : i32
    %8 = arith.select %7, %c1_i32, %c32_i32 : i32
    %9 = vector.broadcast %8 : i32 to vector<4x2x128xi32>
    %10 = arith.remsi %6, %9 : vector<4x2x128xi32>
    %c0_i32_9 = arith.constant 0 : i32
    %11 = vector.broadcast %c0_i32_9 : i32 to vector<4x2x128xi32>
    %12 = arith.cmpi ne, %10, %11 : vector<4x2x128xi32>
    %c0_i32_10 = arith.constant 0 : i32
    %13 = vector.broadcast %c0_i32_10 : i32 to vector<4x2x128xi32>
    %14 = arith.cmpi slt, %10, %13 : vector<4x2x128xi32>
    %c0_i32_11 = arith.constant 0 : i32
    %15 = arith.cmpi slt, %8, %c0_i32_11 : i32
    %16 = vector.broadcast %15 : i1 to vector<4x2x128xi1>
    %17 = vector.broadcast %16 : vector<4x2x128xi1> to vector<4x2x128xi1>
    %18 = arith.xori %14, %17 : vector<4x2x128xi1>
    %19 = arith.andi %18, %12 : vector<4x2x128xi1>
    %20 = vector.broadcast %8 : i32 to vector<4x2x128xi32>
    %21 = arith.addi %10, %20 : vector<4x2x128xi32>
    %22 = arith.select %19, %21, %10 : vector<4x2x128xi1>, vector<4x2x128xi32>
    %c16_i32 = arith.constant 16 : i32
    %23 = vector.broadcast %c16_i32 : i32 to vector<4x2x128xi32>
    %24 = arith.cmpi slt, %22, %23 : vector<4x2x128xi32>
    %25 = vector.broadcast %1 : vector<1x2x128xf32> to vector<4x2x128xf32>
    %26 = arith.mulf %4, %25 : vector<4x2x128xf32>
    %c112_i32 = arith.constant 112 : i32
    %27 = tpu.dynamic_rotate %4 by %c112_i32 dim 2 : vector<4x2x128xf32>, i32 -> vector<4x2x128xf32>
    %c16_i32_12 = arith.constant 16 : i32
    %28 = tpu.dynamic_rotate %4 by %c16_i32_12 dim 2 : vector<4x2x128xf32>, i32 -> vector<4x2x128xf32>
    %29 = arith.select %24, %27, %28 : vector<4x2x128xi1>, vector<4x2x128xf32>
    %30 = vector.broadcast %3 : vector<1x2x128xf32> to vector<4x2x128xf32>
    %31 = arith.mulf %29, %30 : vector<4x2x128xf32>
    %32 = arith.addf %26, %31 : vector<4x2x128xf32>
    %c0_13 = arith.constant 0 : index
    %c0_14 = arith.constant 0 : index
    %c0_15 = arith.constant 0 : index
    %33 = vector.load %arg6[%c0_13, %c0_14, %c0_15] : memref<4x2x128xf32, #tpu.memory_space<vmem>>, vector<4x2x128xf32>
    tpu.vector_store %arg6[%c0_13, %c0_14, %c0_15], %32 {strides = array<i32>} : memref<4x2x128xf32, #tpu.memory_space<vmem>>, vector<4x2x128xf32>,
    %34 = vector.broadcast %1 : vector<1x2x128xf32> to vector<4x2x128xf32>
    %35 = arith.mulf %5, %34 : vector<4x2x128xf32>
    %c112_i32_16 = arith.constant 112 : i32
    %36 = tpu.dynamic_rotate %5 by %c112_i32_16 dim 2 : vector<4x2x128xf32>, i32 -> vector<4x2x128xf32>
    %c16_i32_17 = arith.constant 16 : i32
    %37 = tpu.dynamic_rotate %5 by %c16_i32_17 dim 2 : vector<4x2x128xf32>, i32 -> vector<4x2x128xf32>
    %38 = arith.select %24, %36, %37 : vector<4x2x128xi1>, vector<4x2x128xf32>
    %39 = vector.broadcast %3 : vector<1x2x128xf32> to vector<4x2x128xf32>
    %40 = arith.mulf %38, %39 : vector<4x2x128xf32>
    %41 = arith.addf %35, %40 : vector<4x2x128xf32>
    %c0_18 = arith.constant 0 : index
    %c0_19 = arith.constant 0 : index
    %c0_20 = arith.constant 0 : index
    %42 = vector.load %arg7[%c0_18, %c0_19, %c0_20] : memref<4x2x128xf32, #tpu.memory_space<vmem>>, vector<4x2x128xf32>
    tpu.vector_store %arg7[%c0_18, %c0_19, %c0_20], %41 {strides = array<i32>} : memref<4x2x128xf32, #tpu.memory_space<vmem>>, vector<4x2x128xf32>,
    return
  }
  func.func @transform_0(%arg0: i32, %arg1: i32) -> (i32, i32) {
    %c0_i32 = arith.constant 0 : i32
    %c0_i32_0 = arith.constant 0 : i32
    return %arg0, %c0_i32 : i32, i32
  }
  func.func @transform_1(%arg0: i32, %arg1: i32) -> (i32, i32) {
    %c0_i32 = arith.constant 0 : i32
    %c0_i32_0 = arith.constant 0 : i32
    return %arg0, %c0_i32 : i32, i32
  }
  func.func @transform_2(%arg0: i32, %arg1: i32) -> (i32, i32, i32) {
    %c0_i32 = arith.constant 0 : i32
    %c0_i32_0 = arith.constant 0 : i32
    return %arg1, %arg0, %c0_i32 : i32, i32, i32
  }
  func.func @transform_3(%arg0: i32, %arg1: i32) -> (i32, i32, i32) {
    %c0_i32 = arith.constant 0 : i32
    %c0_i32_0 = arith.constant 0 : i32
    return %arg1, %arg0, %c0_i32 : i32, i32, i32
  }
  func.func @transform_4(%arg0: i32, %arg1: i32) -> (i32, i32, i32) {
    %c0_i32 = arith.constant 0 : i32
    %c0_i32_0 = arith.constant 0 : i32
    return %arg1, %arg0, %c0_i32 : i32, i32, i32
  }
  func.func @transform_5(%arg0: i32, %arg1: i32) -> (i32, i32, i32) {
    %c0_i32 = arith.constant 0 : i32
    %c0_i32_0 = arith.constant 0 : i32
    return %arg1, %arg0, %c0_i32 : i32, i32, i32
  }
}

</mosaic_0001>

<bundles_post_ra>
// kernel: squeeze.2
= control target key start
LH: loop header
LB: loop body
LE: loop exit
PB: predicated region body
PF: predicated region fallthrough
CT: control target
= control target key end

     0   :  { %s7_s6 = smov 3  ;;  %s14_s9 = smov 3  ;;  %vm4_vm0 = vcmask 261120   ;;  %vm11_vm1 = vcmask 1048320   ;;  %vm18_vm2 = vcmask 785920   ;;  %vm25_vm3 = vcmask 523520   ;;  %s69_s0 = inlined_call_operand.vmem [shape: f32[1,1,8,32], index: 0, kind: input, shape index: {}]   ;;  %s70_s1 = inlined_call_operand.vmem [shape: f32[2,128], index: 1, kind: output, shape index: {}]  }
   0x1   :  { %v35_v0 = vld [vmem:[%s69_s0 + $0x3] ss:$4 sm:%s7_s6]   ;;  %s41_s10 = smov 96   ;;  %s21_s11 = smov 3  ;;  %v36_v1 = vld [vmem:[%s69_s0 + $0x2] ss:$4 sm:%s14_s9]  }
   0x2   :  { %9 = vrot.lane.b32.xlu0 %v35_v0, %s41_s10  ;;  %v37_v2 = vld [vmem:[%s69_s0 + $0x1] ss:$4 sm:%s21_s11]   ;;  %s2_s16 = smov 3  ;;  %s42_s17 = smov 32  }
   0x3   :  { %23 = vrot.lane.b32.xlu1 %v37_v2, %s42_s17  ;;  %v3_v3 = vld [vmem:[%s69_s0] ss:$4 sm:%s2_s16]   ;;  %s43_s0 = smov 64  }
   0x4   :  { %5 = vst.msk [vmem:[#allocation0] sm:$0x3] %vm4_vm0, %v3_v3  }
   0x6   :  { %16 = vrot.lane.b32.xlu0 %v36_v1, %s43_s0 }
  0x74   :  { %v10_v4 = vpop.permute.xlu0 %9  }
  0x75   :  { %12 = vst.msk [vmem:[#allocation0] sm:$0x3] %vm11_vm1, %v10_v4   ;;  %v24_v5 = vpop.permute.xlu1 %23  }
  0x78   :  { %v17_v6 = vpop.permute.xlu0 %16  }
  0x79   :  { %19 = vst.msk [vmem:[#allocation0] sm:$0x3] %vm18_vm2, %v17_v6  }
  0x7a   :  { %26 = vst.msk [vmem:[#allocation0] sm:$0x3] %vm25_vm3, %v24_v5  }
  0x81   :  { %v31_v7 = vld [vmem:[#allocation0] sm:$0x3] }
  0x82   :  { %34 = vst [vmem:[%s70_s1] sm:$0x3] %v31_v7 }

// kernel: quant_rotary_emb_forward.1
= control target key start
LH: loop header
LB: loop body
LE: loop exit
PB: predicated region body
PF: predicated region fallthrough
CT: control target
= control target key end

     0   :  { %s711_s18 = smov 0   ;;  %s713_s19 = smov 0   ;;  %s794_s0 = inlined_call_operand.vmem [shape: f32[2,128], index: 0, kind: input, shape index: {}]   ;;  %s795_s1 = inlined_call_operand.vmem [shape: f32[2,128], index: 1, kind: input, shape index: {}]   ;;  %s796_s2 = inlined_call_operand.vmem [shape: f32[8,2,128], index: 2, kind: input, shape index: {}]   ;;  %s797_s3 = inlined_call_operand.vmem [shape: f32[8,2,128], index: 3, kind: input, shape index: {}]   ;;  %s798_s4 = inlined_call_operand.vmem [shape: f32[8,2,128], index: 4, kind: output, shape index: {0}]   ;;  %s799_s5 = inlined_call_operand.vmem [shape: f32[8,2,128], index: 5, kind: output, shape index: {1}]  }
   0x1   :  { %s715_s20 = smov 0  }
   0x2 LB: > { %s25_s21 = sadd.s32 1, %s673_s19  ;;  %p618_p0 = scmp.ge.s32.totalorder %s677_s20, 1  ;;  %s677_s20 = sphi %s715_s20, %s16_s20   ;;  %s673_s19 = sphi %s713_s19, %s803_s19   ;;  %s669_s18 = sphi %s711_s18, %s802_s18  }
   0x3   : > { %p26_p1 = scmp.ge.s32.totalorder %s25_s21, 2  ;;  %p246_p2 = scmp.lt.s32.totalorder %s677_s20, 3 }
   0x5   : > { %s805_s21 = smov (%p26_p1, %s25_s21), 0  ;;  %p247_p3 = pnand %p618_p0, %p246_p2 }
   0x6   : > { %s619_s22 = sshll.u32 (!%p247_p3), %s669_s18, 2  ;;  %s679_s30 = smov (!%p247_p3), 112  }
   0x7   : > { %250 = sbr.rel (%p247_p3) target bundleno = 166 (0xa6), region = 36  ;;  %p313_p4 = scmp.lt.s32.totalorder (!%p247_p3), %s619_s22, 7 }
   0x8   : > { %s680_s6 = smov (!%p247_p3), 16  }
   0xc   : > { %s807_s22 = smov (!%p313_p4, %s619_s22), 7  ;;  %v358_v8 = vlaneseq  ;;  %v348_v13 = vld [vmem:[%s794_s0] sm:$0x3] }
   0xd   : > { %s729_s23 = sshll.u32 %s807_s22, 1  ;;  %v349_v15 = vld [vmem:[%s795_s1] sm:$0x3] }
   0xe   : > { %s328_s26 = scalar_lea.vmem %s797_s3, %s729_s23  ;;  %s319_s29 = scalar_lea.vmem %s796_s2, %s729_s23  ;;  %v359_v9 = vand.u32 127, %v358_v8 }
   0xf   : > { %v354_v0 = vld [vmem:[%s328_s26] sm:$0x3]  ;;  %v351_v2 = vld [vmem:[%s319_s29 + $0x2] sm:$0x3]  ;;  %v352_v4 = vld [vmem:[%s319_s29 + $0x4] sm:$0x3]  ;;  %s757_s13 = scalar_lea.vmem %s799_s5, %s729_s23  ;;  %s763_s16 = scalar_lea.vmem %s798_s4, %s729_s23 }
  0x10   : > { %v350_v1 = vld [vmem:[%s319_s29] sm:$0x3]  ;;  %413 = vrot.lane.b32.xlu1 %v354_v0, %s679_s30  ;;  %v355_v3 = vld [vmem:[%s328_s26 + $0x2] sm:$0x3]  ;;  %v356_v5 = vld [vmem:[%s328_s26 + $0x4] sm:$0x3]  ;;  %v409_v16 = vmul.f32 %v354_v0, %v348_v13  ;;  %v374_v24 = vmul.f32 %v351_v2, %v348_v13  ;;  %v375_v37 = vmul.f32 %v352_v4, %v348_v13 }
  0x11   : > { %377 = vrot.lane.b32.xlu0 %v350_v1, %s679_s30  ;;  %v353_v6 = vld [vmem:[%s319_s29 + $0x6] sm:$0x3]  ;;  %v364_v10 = vand.u32 31, %v359_v9  ;;  %v373_v17 = vmul.f32 %v350_v1, %v348_v13  ;;  %v410_v31 = vmul.f32 %v355_v3, %v348_v13  ;;  %v411_v43 = vmul.f32 %v356_v5, %v348_v13 }
  0x12   : > { %v357_v7 = vld [vmem:[%s328_s26 + $0x6] sm:$0x3]  ;;  %v376_v49 = vmul.f32 %v353_v6, %v348_v13 }
  0x13   : > { %vm742_vm0 = vcmp.lt.s32.totalorder %v364_v10, 16  ;;  %v412_v55 = vmul.f32 %v357_v7, %v348_v13 }
  0x14   : > { %421 = vrot.lane.b32.xlu1 %v354_v0, %s680_s6 }
  0x15   : > { %385 = vrot.lane.b32.xlu0 %v350_v1, %s680_s6 }
  0x18   : > { %387 = vrot.lane.b32.xlu1 %v351_v2, %s680_s6 }
  0x19   : > { %379 = vrot.lane.b32.xlu0 %v351_v2, %s679_s30 }
  0x1c   : > { %423 = vrot.lane.b32.xlu1 %v355_v3, %s680_s6 }
  0x1d   : > { %415 = vrot.lane.b32.xlu0 %v355_v3, %s679_s30 }
  0x20   : > { %389 = vrot.lane.b32.xlu1 %v352_v4, %s680_s6 }
  0x21   : > { %381 = vrot.lane.b32.xlu0 %v352_v4, %s679_s30 }
  0x24   : > { %425 = vrot.lane.b32.xlu1 %v356_v5, %s680_s6 }
  0x25   : > { %417 = vrot.lane.b32.xlu0 %v356_v5, %s679_s30 }
  0x28   : > { %391 = vrot.lane.b32.xlu1 %v353_v6, %s680_s6 }
  0x29   : > { %383 = vrot.lane.b32.xlu0 %v353_v6, %s679_s30 }
  0x2c   : > { %427 = vrot.lane.b32.xlu1 %v357_v7, %s680_s6 }
  0x2d   : > { %419 = vrot.lane.b32.xlu0 %v357_v7, %s679_s30 }
  0x82   : > { %v414_v11 = vpop.permute.xlu1 %413 }
  0x83   : > { %v378_v12 = vpop.permute.xlu0 %377 }
  0x86   : > { %v422_v18 = vpop.permute.xlu1 %421 }
  0x87   : > { %v386_v19 = vpop.permute.xlu0 %385  ;;  %v429_v20 = vsel %vm742_vm0, %v414_v11, %v422_v18 }
  0x88   : > { %v393_v21 = vsel %vm742_vm0, %v378_v12, %v386_v19  ;;  %v433_v22 = vmul.f32 %v429_v20, %v349_v15 }
  0x89   : > { %v397_v23 = vmul.f32 %v393_v21, %v349_v15 }
  0x8a   : > { %v437_v25 = vadd.f32 %v433_v22, %v409_v16  ;;  %v388_v27 = vpop.permute.xlu1 %387 }
  0x8b   : > { %v401_v26 = vadd.f32 %v397_v23, %v373_v17  ;;  %v380_v28 = vpop.permute.xlu0 %379 }
  0x8c   : > { %v394_v29 = vsel %vm742_vm0, %v380_v28, %v388_v27  ;;  %441 = vst [vmem:[%s757_s13] sm:$0x3] %v437_v25 }
  0x8d   : > { %405 = vst [vmem:[%s763_s16] sm:$0x3] %v401_v26  ;;  %v398_v30 = vmul.f32 %v394_v29, %v349_v15 }
  0x8e   : > { %v424_v33 = vpop.permute.xlu1 %423 }
  0x8f   : > { %v402_v32 = vadd.f32 %v398_v30, %v374_v24  ;;  %v416_v34 = vpop.permute.xlu0 %415 }
  0x90   : > { %v430_v35 = vsel %vm742_vm0, %v416_v34, %v424_v33 }
  0x91   : > { %406 = vst [vmem:[%s763_s16 + $0x2] sm:$0x3] %v402_v32  ;;  %v434_v36 = vmul.f32 %v430_v35, %v349_v15 }
  0x92   : > { %v390_v39 = vpop.permute.xlu1 %389 }
  0x93   : > { %v438_v38 = vadd.f32 %v434_v36, %v410_v31  ;;  %v382_v40 = vpop.permute.xlu0 %381 }
  0x94   : > { %v395_v41 = vsel %vm742_vm0, %v382_v40, %v390_v39 }
  0x95   : > { %442 = vst [vmem:[%s757_s13 + $0x2] sm:$0x3] %v438_v38  ;;  %v399_v42 = vmul.f32 %v395_v41, %v349_v15 }
  0x96   : > { %v426_v45 = vpop.permute.xlu1 %425 }
  0x97   : > { %v403_v44 = vadd.f32 %v399_v42, %v375_v37  ;;  %v418_v46 = vpop.permute.xlu0 %417 }
  0x98   : > { %v431_v47 = vsel %vm742_vm0, %v418_v46, %v426_v45 }
  0x99   : > { %407 = vst [vmem:[%s763_s16 + $0x4] sm:$0x3] %v403_v44  ;;  %v435_v48 = vmul.f32 %v431_v47, %v349_v15 }
  0x9a   : > { %v392_v51 = vpop.permute.xlu1 %391 }
  0x9b   : > { %v439_v50 = vadd.f32 %v435_v48, %v411_v43  ;;  %v384_v52 = vpop.permute.xlu0 %383 }
  0x9c   : > { %v396_v53 = vsel %vm742_vm0, %v384_v52, %v392_v51 }
  0x9d   : > { %443 = vst [vmem:[%s757_s13 + $0x4] sm:$0x3] %v439_v50  ;;  %v400_v54 = vmul.f32 %v396_v53, %v349_v15 }
  0x9e   : > { %v428_v57 = vpop.permute.xlu1 %427 }
  0x9f   : > { %v404_v56 = vadd.f32 %v400_v54, %v376_v49  ;;  %v420_v58 = vpop.permute.xlu0 %419 }
  0xa0   : > { %v432_v59 = vsel %vm742_vm0, %v420_v58, %v428_v57 }
  0xa1   : > { %408 = vst [vmem:[%s763_s16 + $0x6] sm:$0x3] %v404_v56  ;;  %v436_v60 = vmul.f32 %v432_v59, %v349_v15 }
  0xa3   : > { %v440_v61 = vadd.f32 %v436_v60, %v412_v55 }
  0xa5   : > { %444 = vst [vmem:[%s757_s13 + $0x6] sm:$0x3] %v440_v61 }
  0xa6 PF: > { %s16_s20 = sadd.s32 1, %s677_s20   ;;  %s802_s18 = smov %s673_s19 }
  0xa7   : > { %p13_p5 = scmp.ge.s32.totalorder %s16_s20, 4   ;;  %s803_s19 = smov %s805_s21 }
  0xa9   :  { %15 = sbr.rel (!%p13_p5) target bundleno = 2 (0x2), region = 87 }

</bundles_post_ra>
